<compile_context>
chip_gen: v6e
topology: v6e:2x2x1
jax: 0.10.0
libtpu: 0.0.40
codegen_flags: <defaults>
</compile_context>

<pallas_src>
import functools

import jax
import jax.numpy as jnp
from jax.experimental import pallas as pl
from jax.experimental.pallas import tpu as pltpu

EPS = 1e-5  # torch.nn.GroupNorm default


# --------------------------------------------------------------------------
# Kernel 1: GroupNorm statistics (channel sum / sum-of-squares per batch)
# --------------------------------------------------------------------------
def _gn_stats_kernel(x_ref, sum_ref, sq_ref, ssum_sc, ssq_sc):
    si = pl.program_id(1)

    @pl.when(si == 0)
    def _init():
        ssum_sc[...] = jnp.zeros_like(ssum_sc)
        ssq_sc[...] = jnp.zeros_like(ssq_sc)

    x = x_ref[0]                                              # (ts, C) f32
    ssum_sc[...] += jnp.sum(x, axis=0, keepdims=True)         # (1, C) f32
    ssq_sc[...] += jnp.sum(x * x, axis=0, keepdims=True)      # (1, C) f32

    @pl.when(si == pl.num_programs(1) - 1)
    def _finalize():
        sum_ref[0] = ssum_sc[...]
        sq_ref[0] = ssq_sc[...]


# --------------------------------------------------------------------------
# Kernel 2: normalize (per-channel scale/shift) + fused q|k|v projection
# --------------------------------------------------------------------------
def _norm_qkv_kernel(x_ref, scale_ref, shift_ref, w_ref, b_ref, qkv_ref):
    h = x_ref[0] * scale_ref[0] + shift_ref[0]                # (ts, C) f32
    hb = h.astype(jnp.bfloat16)
    for i in range(3):                                        # unrolled: q, k, v
        out = jnp.dot(hb, w_ref[i],
                      preferred_element_type=jnp.float32) + b_ref[i]
        qkv_ref[0, i] = out.astype(jnp.bfloat16)              # (ts, C) bf16


# --------------------------------------------------------------------------
# Kernel 3: attention (K/V resident per batch) + output projection + residual
# --------------------------------------------------------------------------
def _attn_proj_kernel(q_ref, k_ref, v_ref, x_ref, wp_ref, bp_ref, o_ref):
    q = q_ref[0, 0]                                           # (tq, C) bf16, pre-scaled
    k = k_ref[0, 0]                                           # (S, C) bf16
    v = v_ref[0, 0]                                           # (S, C) bf16

    # scores: contract last dims of q and k (NT form) -> no explicit transpose
    s = jax.lax.dot_general(q, k, (((1,), (1,)), ((), ())),
                            preferred_element_type=jnp.float32)   # (tq, S) f32
    m = jnp.max(s, axis=-1, keepdims=True)
    p = jnp.exp(s - m)
    l = jnp.sum(p, axis=-1, keepdims=True)
    acc = jnp.dot(p.astype(jnp.bfloat16), v,
                  preferred_element_type=jnp.float32)             # (tq, C) f32
    attn = acc * pl.reciprocal(l, approx=True)                    # EUP reciprocal

    out = jnp.dot(attn.astype(jnp.bfloat16), wp_ref[...],
                  preferred_element_type=jnp.float32) + bp_ref[...]
    o_ref[0] = (x_ref[0] + out).astype(o_ref.dtype)               # residual, f32


# --------------------------------------------------------------------------
# Wrappers
# --------------------------------------------------------------------------
def _pick_tile(S, cap):
    """Largest divisor of S that is <= cap and a multiple of 8 (or S itself)."""
    for t in range(min(S, cap), 0, -1):
        if S % t == 0 and (t % 8 == 0 or t == S):
            return t
    return S


def _ensure_parallel_units(tile, S, B, min_units=2):
    """Shrink the tile so B * (S // tile) >= min_units when cheaply possible."""
    while (B * (S // tile) < min_units and tile % 2 == 0 and tile >= 16
           and S % (tile // 2) == 0):
        tile //= 2
    return tile


def attn_block_pallas_nhwc(x_nhwc, params, num_groups, *, ts=None, tq=None):
    """x_nhwc: (B, H, W, C) float32. Returns (B, H, W, C). No layout transposes."""
    B, H, W, C = x_nhwc.shape
    S = H * W
    G = num_groups
    assert C % G == 0
    x_bsc = x_nhwc.reshape(B, S, C)

    # Tile sizes: 256 targets v6e/v7x's 2x256^2 MXU; pass 128 explicitly on v5e.
    if ts is None:
        ts = _pick_tile(S, 256)
    if tq is None:
        tq = _pick_tile(S, 256)
    ts = _ensure_parallel_units(ts, S, B)
    tq = _ensure_parallel_units(tq, S, B)
    assert S % ts == 0 and S % tq == 0, (S, ts, tq)
    nst, nq = S // ts, S // tq

    gamma = params["gamma"].astype(jnp.float32)                       # (C,)
    beta = params["beta"].astype(jnp.float32)                         # (C,)

    # Stacked q|k|v weights, attention scale folded into the q slice.
    scale_attn = float(C) ** -0.5
    w_qkv = jnp.stack([params["wq"] * scale_attn, params["wk"], params["wv"]],
                      axis=0).astype(jnp.bfloat16)                    # (3, C, C)
    b_qkv = jnp.stack([params["bq"] * scale_attn, params["bk"], params["bv"]],
                      axis=0).reshape(3, 1, C).astype(jnp.float32)    # (3, 1, C)
    wp = params["wp"].astype(jnp.bfloat16)                            # (C, C)
    bp = params["bp"].reshape(1, C).astype(jnp.float32)               # (1, C)

    vmem_bytes = 32 * 1024 * 1024

    # ---- Kernel 1: GroupNorm statistics ----
    xsum, xsq = pl.pallas_call(
        _gn_stats_kernel,
        out_shape=(jax.ShapeDtypeStruct((B, 1, C), jnp.float32),
                   jax.ShapeDtypeStruct((B, 1, C), jnp.float32)),
        grid_spec=pltpu.PrefetchScalarGridSpec(
            num_scalar_prefetch=0,
            grid=(B, nst),
            in_specs=[pl.BlockSpec((1, ts, C), lambda b, s: (b, s, 0))],
            out_specs=[pl.BlockSpec((1, 1, C), lambda b, s: (b, 0, 0)),
                       pl.BlockSpec((1, 1, C), lambda b, s: (b, 0, 0))],
            scratch_shapes=[pltpu.VMEM((1, C), jnp.float32),
                            pltpu.VMEM((1, C), jnp.float32)],
        ),
        compiler_params=pltpu.CompilerParams(
            dimension_semantics=("parallel", "arbitrary"),
            vmem_limit_bytes=vmem_bytes),
    )(x_bsc)

    # Tiny O(B*C) glue: group reduce -> per-channel normalization scale/shift.
    n = float(S * (C // G))
    sum_g = xsum.reshape(B, G, C // G).sum(axis=-1)                   # (B, G)
    sq_g = xsq.reshape(B, G, C // G).sum(axis=-1)                     # (B, G)
    mean_g = sum_g / n
    var_g = sq_g / n - mean_g * mean_g
    rstd_g = jax.lax.rsqrt(var_g + EPS)
    mean_c = jnp.repeat(mean_g, C // G, axis=-1)                      # (B, C)
    rstd_c = jnp.repeat(rstd_g, C // G, axis=-1)                      # (B, C)
    scale_c = (gamma[None, :] * rstd_c).reshape(B, 1, C).astype(jnp.float32)
    shift_c = (beta[None, :] - mean_c * gamma[None, :] * rstd_c
               ).reshape(B, 1, C).astype(jnp.float32)

    # ---- Kernel 2: normalize + fused QKV projection ----
    qkv = pl.pallas_call(
        _norm_qkv_kernel,
        out_shape=jax.ShapeDtypeStruct((B, 3, S, C), jnp.bfloat16),
        grid_spec=pltpu.PrefetchScalarGridSpec(
            num_scalar_prefetch=0,
            grid=(B, nst),
            in_specs=[
                pl.BlockSpec((1, ts, C), lambda b, s: (b, s, 0)),     # x tile
                pl.BlockSpec((1, 1, C), lambda b, s: (b, 0, 0)),      # scale
                pl.BlockSpec((1, 1, C), lambda b, s: (b, 0, 0)),      # shift
                pl.BlockSpec((3, C, C), lambda b, s: (0, 0, 0)),      # W_qkv bf16
                pl.BlockSpec((3, 1, C), lambda b, s: (0, 0, 0)),      # b_qkv f32
            ],
            out_specs=pl.BlockSpec((1, 3, ts, C), lambda b, s: (b, 0, s, 0)),
        ),
        compiler_params=pltpu.CompilerParams(
            dimension_semantics=("parallel", "parallel"),
            vmem_limit_bytes=vmem_bytes),
    )(x_bsc, scale_c, shift_c, w_qkv, b_qkv)

    # ---- Kernel 3: attention (K/V resident per batch) + proj + residual ----
    # K/V index maps ignore the q-tile axis, so Pallas DMAs them from HBM once
    # per batch element and keeps them resident across all q tiles.
    out_bsc = pl.pallas_call(
        _attn_proj_kernel,
        out_shape=jax.ShapeDtypeStruct((B, S, C), jnp.float32),
        grid_spec=pltpu.PrefetchScalarGridSpec(
            num_scalar_prefetch=0,
            grid=(B, nq),
            in_specs=[
                pl.BlockSpec((1, 1, tq, C), lambda b, qi: (b, 0, qi, 0)),  # q tile
                pl.BlockSpec((1, 1, S, C), lambda b, qi: (b, 1, 0, 0)),    # K (resident)
                pl.BlockSpec((1, 1, S, C), lambda b, qi: (b, 2, 0, 0)),    # V (resident)
                pl.BlockSpec((1, tq, C), lambda b, qi: (b, qi, 0)),        # x (residual)
                pl.BlockSpec((C, C), lambda b, qi: (0, 0)),                # wp bf16
                pl.BlockSpec((1, C), lambda b, qi: (0, 0)),                # bp f32
            ],
            out_specs=pl.BlockSpec((1, tq, C), lambda b, qi: (b, qi, 0)),
        ),
        compiler_params=pltpu.CompilerParams(
            dimension_semantics=("parallel", "parallel"),
            vmem_limit_bytes=vmem_bytes),
    )(qkv, qkv, qkv, x_bsc, wp, bp)

    return out_bsc.reshape(B, H, W, C)


def attn_block_pallas(x_nchw, params, num_groups, *, ts=None, tq=None):
    """NCHW interface matching the PyTorch module. Prefer the NHWC entry point
    in a real pipeline to avoid the two layout transposes below."""
    x_nhwc = jnp.transpose(x_nchw, (0, 2, 3, 1))
    out_nhwc = attn_block_pallas_nhwc(x_nhwc, params, num_groups, ts=ts, tq=tq)
    return jnp.transpose(out_nhwc, (0, 3, 1, 2))


# --------------------------------------------------------------------------
# Pure-JAX reference (f32) mirroring the PyTorch forward
# --------------------------------------------------------------------------
def attn_block_reference(x_nchw, params, num_groups):
    B, C, H, W = x_nchw.shape
    G = num_groups
    xr = x_nchw.reshape(B, G, (C // G) * H * W)
    mean = xr.mean(axis=-1, keepdims=True)
    var = xr.var(axis=-1, keepdims=True)
    h = ((xr - mean) / jnp.sqrt(var + EPS)).reshape(B, C, H, W)
    h = h * params["gamma"][None, :, None, None] + params["beta"][None, :, None, None]
    hs = jnp.transpose(h, (0, 2, 3, 1)).reshape(B, H * W, C)
    q = hs @ params["wq"] + params["bq"]
    k = hs @ params["wk"] + params["bk"]
    v = hs @ params["wv"] + params["bv"]
    w = jnp.einsum("bqc,bkc->bqk", q, k) * (C ** -0.5)
    w = jax.nn.softmax(w, axis=-1)
    a = jnp.einsum("bqk,bkc->bqc", w, v)
    o = a @ params["wp"] + params["bp"]
    o = jnp.transpose(o.reshape(B, H, W, C), (0, 3, 1, 2))
    return x_nchw + o


def make_params(key, C):
    """Deterministic synthetic parameters (xavier-uniform-ish). Conv weights are
    stored as (C_in, C_out); equivalent to torch conv weight[:, :, 0, 0].T."""
    keys = jax.random.split(key, 10)
    bound = (6.0 / (2.0 * C)) ** 0.5
    u = lambda k, shp, b=bound: jax.random.uniform(k, shp, jnp.float32, -b, b)
    return {
        "gamma": 1.0 + 0.1 * jax.random.normal(keys[0], (C,), jnp.float32),
        "beta": 0.1 * jax.random.normal(keys[1], (C,), jnp.float32),
        "wq": u(keys[2], (C, C)), "bq": 0.01 * jax.random.normal(keys[3], (C,)),
        "wk": u(keys[4], (C, C)), "bk": 0.01 * jax.random.normal(keys[5], (C,)),
        "wv": u(keys[6], (C, C)), "bv": 0.01 * jax.random.normal(keys[7], (C,)),
        "wp": u(keys[8], (C, C)), "bp": 0.01 * jax.random.normal(keys[9], (C,)),
    }


if __name__ == "__main__":
    B, C, H, W = 2, 64, 8, 8          # in_ch=64, num_groups=32 (module default)
    NUM_GROUPS = 32

    key = jax.random.PRNGKey(0)
    kx, kp = jax.random.split(key)
    x = jax.random.normal(kx, (B, C, H, W), jnp.float32)
    params = make_params(kp, C)

    # ts=tq=32 so the S-tiled stats / multi-q-tile paths are exercised (S=64).
    run = jax.jit(functools.partial(attn_block_pallas, num_groups=NUM_GROUPS,
                                    ts=32, tq=32))
    out = jax.block_until_ready(run(x, params))

    ref = attn_block_reference(x, params, NUM_GROUPS)
    assert out.shape == (B, C, H, W)
    max_err = float(jnp.max(jnp.abs(out - ref)))
    # bf16 MXU inputs (f32 accumulation) -> loosened tolerance vs f32 reference.
    assert max_err < 5e-2, max_err

    print("KERNEL_OK")
</pallas_src>

<mosaic_0001>
module attributes {stable_mosaic.version = 11 : i64} {
  func.func @_gn_stats_kernel(%arg0: i32, %arg1: i32, %arg2: memref<1x32x64xf32, #tpu.memory_space<vmem>>, %arg3: memref<1x1x64xf32, #tpu.memory_space<vmem>>, %arg4: memref<1x1x64xf32, #tpu.memory_space<vmem>>, %arg5: memref<1x64xf32, #tpu.memory_space<vmem>>, %arg6: memref<1x64xf32, #tpu.memory_space<vmem>>) attributes {dimension_semantics = [#tpu.dimension_semantics<parallel>, #tpu.dimension_semantics<arbitrary>], iteration_bounds = array<i64: 2, 2>, scalar_prefetch = 0 : i64, scratch_operands = 2 : i64, tpu.core_type = #tpu.core_type<tc>, window_params = [{transform_indices = @transform_0, window_bounds = array<i64: 1, 32, 64>}, {transform_indices = @transform_1, window_bounds = array<i64: 1, 1, 64>}, {transform_indices = @transform_2, window_bounds = array<i64: 1, 1, 64>}]} {
    %c0_i32 = arith.constant 0 : i32
    %0 = arith.cmpi eq, %arg1, %c0_i32 : i32
    %1 = arith.extui %0 : i1 to i32
    %c0_i32_0 = arith.constant 0 : i32
    %2 = arith.cmpi ne, %1, %c0_i32_0 : i32
    scf.if %2 {
      %cst_13 = arith.constant 0.000000e+00 : f32
      %19 = vector.broadcast %cst_13 : f32 to vector<1x64xf32>
      %c0_14 = arith.constant 0 : index
      %c0_15 = arith.constant 0 : index
      %20 = vector.load %arg5[%c0_14, %c0_15] : memref<1x64xf32, #tpu.memory_space<vmem>>, vector<1x64xf32>
      tpu.vector_store %arg5[%c0_14, %c0_15], %19 {strides = array<i32>} : memref<1x64xf32, #tpu.memory_space<vmem>>, vector<1x64xf32>,
      %cst_16 = arith.constant 0.000000e+00 : f32
      %21 = vector.broadcast %cst_16 : f32 to vector<1x64xf32>
      %c0_17 = arith.constant 0 : index
      %c0_18 = arith.constant 0 : index
      %22 = vector.load %arg6[%c0_17, %c0_18] : memref<1x64xf32, #tpu.memory_space<vmem>>, vector<1x64xf32>
      tpu.vector_store %arg6[%c0_17, %c0_18], %21 {strides = array<i32>} : memref<1x64xf32, #tpu.memory_space<vmem>>, vector<1x64xf32>,
    } else {
    }
    %c0 = arith.constant 0 : index
    %c0_1 = arith.constant 0 : index
    %c0_2 = arith.constant 0 : index
    %3 = vector.load %arg2[%c0, %c0_1, %c0_2] : memref<1x32x64xf32, #tpu.memory_space<vmem>>, vector<1x32x64xf32>
    %4 = vector.shape_cast %3 : vector<1x32x64xf32> to vector<32x64xf32>
    %c0_3 = arith.constant 0 : index
    %c0_4 = arith.constant 0 : index
    %5 = vector.load %arg5[%c0_3, %c0_4] : memref<1x64xf32, #tpu.memory_space<vmem>>, vector<1x64xf32>
    %cst = arith.constant dense<0.000000e+00> : vector<64xf32>
    %6 = vector.multi_reduction <add>, %4, %cst [0] : vector<32x64xf32> to vector<64xf32>
    %7 = vector.shape_cast %6 : vector<64xf32> to vector<1x64xf32>
    %8 = arith.addf %5, %7 : vector<1x64xf32>
    %c0_5 = arith.constant 0 : index
    %c0_6 = arith.constant 0 : index
    %9 = vector.load %arg5[%c0_5, %c0_6] : memref<1x64xf32, #tpu.memory_space<vmem>>, vector<1x64xf32>
    tpu.vector_store %arg5[%c0_5, %c0_6], %8 {strides = array<i32>} : memref<1x64xf32, #tpu.memory_space<vmem>>, vector<1x64xf32>,
    %c0_7 = arith.constant 0 : index
    %c0_8 = arith.constant 0 : index
    %10 = vector.load %arg6[%c0_7, %c0_8] : memref<1x64xf32, #tpu.memory_space<vmem>>, vector<1x64xf32>
    %11 = arith.mulf %4, %4 : vector<32x64xf32>
    %cst_9 = arith.constant dense<0.000000e+00> : vector<64xf32>
    %12 = vector.multi_reduction <add>, %11, %cst_9 [0] : vector<32x64xf32> to vector<64xf32>
    %13 = vector.shape_cast %12 : vector<64xf32> to vector<1x64xf32>
    %14 = arith.addf %10, %13 : vector<1x64xf32>
    %c0_10 = arith.constant 0 : index
    %c0_11 = arith.constant 0 : index
    %15 = vector.load %arg6[%c0_10, %c0_11] : memref<1x64xf32, #tpu.memory_space<vmem>>, vector<1x64xf32>
    tpu.vector_store %arg6[%c0_10, %c0_11], %14 {strides = array<i32>} : memref<1x64xf32, #tpu.memory_space<vmem>>, vector<1x64xf32>,
    %c1_i32 = arith.constant 1 : i32
    %16 = arith.cmpi eq, %arg1, %c1_i32 : i32
    %17 = arith.extui %16 : i1 to i32
    %c0_i32_12 = arith.constant 0 : i32
    %18 = arith.cmpi ne, %17, %c0_i32_12 : i32
    scf.if %18 {
      %c0_13 = arith.constant 0 : index
      %c0_14 = arith.constant 0 : index
      %19 = vector.load %arg5[%c0_13, %c0_14] : memref<1x64xf32, #tpu.memory_space<vmem>>, vector<1x64xf32>
      %c0_15 = arith.constant 0 : index
      %c0_16 = arith.constant 0 : index
      %c0_17 = arith.constant 0 : index
      %20 = vector.load %arg3[%c0_15, %c0_16, %c0_17] : memref<1x1x64xf32, #tpu.memory_space<vmem>>, vector<1x1x64xf32>
      %21 = vector.shape_cast %20 : vector<1x1x64xf32> to vector<1x64xf32>
      %22 = vector.shape_cast %19 : vector<1x64xf32> to vector<1x1x64xf32>
      tpu.vector_store %arg3[%c0_15, %c0_16, %c0_17], %22 {strides = array<i32>} : memref<1x1x64xf32, #tpu.memory_space<vmem>>, vector<1x1x64xf32>,
      %c0_18 = arith.constant 0 : index
      %c0_19 = arith.constant 0 : index
      %23 = vector.load %arg6[%c0_18, %c0_19] : memref<1x64xf32, #tpu.memory_space<vmem>>, vector<1x64xf32>
      %c0_20 = arith.constant 0 : index
      %c0_21 = arith.constant 0 : index
      %c0_22 = arith.constant 0 : index
      %24 = vector.load %arg4[%c0_20, %c0_21, %c0_22] : memref<1x1x64xf32, #tpu.memory_space<vmem>>, vector<1x1x64xf32>
      %25 = vector.shape_cast %24 : vector<1x1x64xf32> to vector<1x64xf32>
      %26 = vector.shape_cast %23 : vector<1x64xf32> to vector<1x1x64xf32>
      tpu.vector_store %arg4[%c0_20, %c0_21, %c0_22], %26 {strides = array<i32>} : memref<1x1x64xf32, #tpu.memory_space<vmem>>, vector<1x1x64xf32>,
    } else {
    }
    return
  }
  func.func @transform_0(%arg0: i32, %arg1: i32) -> (i32, i32, i32) {
    %c0_i32 = arith.constant 0 : i32
    %c0_i32_0 = arith.constant 0 : i32
    return %arg0, %arg1, %c0_i32 : i32, i32, i32
  }
  func.func @transform_1(%arg0: i32, %arg1: i32) -> (i32, i32, i32) {
    %c0_i32 = arith.constant 0 : i32
    %c0_i32_0 = arith.constant 0 : i32
    %c0_i32_1 = arith.constant 0 : i32
    return %arg0, %c0_i32, %c0_i32_0 : i32, i32, i32
  }
  func.func @transform_2(%arg0: i32, %arg1: i32) -> (i32, i32, i32) {
    %c0_i32 = arith.constant 0 : i32
    %c0_i32_0 = arith.constant 0 : i32
    %c0_i32_1 = arith.constant 0 : i32
    return %arg0, %c0_i32, %c0_i32_0 : i32, i32, i32
  }
}

module attributes {stable_mosaic.version = 11 : i64} {
  func.func @_norm_qkv_kernel(%arg0: i32, %arg1: i32, %arg2: memref<1x32x64xf32, #tpu.memory_space<vmem>>, %arg3: memref<1x1x64xf32, #tpu.memory_space<vmem>>, %arg4: memref<1x1x64xf32, #tpu.memory_space<vmem>>, %arg5: memref<3x64x64xbf16, #tpu.memory_space<vmem>>, %arg6: memref<3x1x64xf32, #tpu.memory_space<vmem>>, %arg7: memref<1x3x32x64xbf16, #tpu.memory_space<vmem>>) attributes {dimension_semantics = [#tpu.dimension_semantics<parallel>, #tpu.dimension_semantics<parallel>], iteration_bounds = array<i64: 2, 2>, scalar_prefetch = 0 : i64, scratch_operands = 0 : i64, tpu.core_type = #tpu.core_type<tc>, window_params = [{transform_indices = @transform_0, window_bounds = array<i64: 1, 32, 64>}, {transform_indices = @transform_1, window_bounds = array<i64: 1, 1, 64>}, {transform_indices = @transform_2, window_bounds = array<i64: 1, 1, 64>}, {pipeline_mode = #tpu.pipeline_mode<synchronous>, transform_indices = @transform_3, window_bounds = array<i64: 3, 64, 64>}, {pipeline_mode = #tpu.pipeline_mode<synchronous>, transform_indices = @transform_4, window_bounds = array<i64: 3, 1, 64>}, {transform_indices = @transform_5, window_bounds = array<i64: 1, 3, 32, 64>}]} {
    %c0 = arith.constant 0 : index
    %c0_0 = arith.constant 0 : index
    %c0_1 = arith.constant 0 : index
    %0 = vector.load %arg2[%c0, %c0_0, %c0_1] : memref<1x32x64xf32, #tpu.memory_space<vmem>>, vector<1x32x64xf32>
    %1 = vector.shape_cast %0 : vector<1x32x64xf32> to vector<32x64xf32>
    %c0_2 = arith.constant 0 : index
    %c0_3 = arith.constant 0 : index
    %c0_4 = arith.constant 0 : index
    %2 = vector.load %arg3[%c0_2, %c0_3, %c0_4] : memref<1x1x64xf32, #tpu.memory_space<vmem>>, vector<1x1x64xf32>
    %3 = vector.shape_cast %2 : vector<1x1x64xf32> to vector<1x64xf32>
    %4 = vector.broadcast %3 : vector<1x64xf32> to vector<32x64xf32>
    %5 = arith.mulf %1, %4 : vector<32x64xf32>
    %c0_5 = arith.constant 0 : index
    %c0_6 = arith.constant 0 : index
    %c0_7 = arith.constant 0 : index
    %6 = vector.load %arg4[%c0_5, %c0_6, %c0_7] : memref<1x1x64xf32, #tpu.memory_space<vmem>>, vector<1x1x64xf32>
    %7 = vector.shape_cast %6 : vector<1x1x64xf32> to vector<1x64xf32>
    %8 = vector.broadcast %7 : vector<1x64xf32> to vector<32x64xf32>
    %9 = arith.addf %5, %8 : vector<32x64xf32>
    %10 = arith.truncf %9 : vector<32x64xf32> to vector<32x64xbf16>
    %c0_8 = arith.constant 0 : index
    %c0_9 = arith.constant 0 : index
    %c0_10 = arith.constant 0 : index
    %11 = vector.load %arg5[%c0_8, %c0_9, %c0_10] : memref<3x64x64xbf16, #tpu.memory_space<vmem>>, vector<1x64x64xbf16>
    %12 = vector.shape_cast %11 : vector<1x64x64xbf16> to vector<64x64xbf16>
    %cst = arith.constant dense<0.000000e+00> : vector<32x64xf32>
    %13 = tpu.matmul %10, %12, %cst {dimension_numbers = #tpu.dot_dimension_numbers<[1], [0], [0], [1], [0, 0, 1, 1], [], []>} : vector<32x64xbf16>, vector<64x64xbf16>, vector<32x64xf32> -> vector<32x64xf32>
    %c0_11 = arith.constant 0 : index
    %c0_12 = arith.constant 0 : index
    %c0_13 = arith.constant 0 : index
    %14 = vector.load %arg6[%c0_11, %c0_12, %c0_13] : memref<3x1x64xf32, #tpu.memory_space<vmem>>, vector<1x1x64xf32>
    %15 = vector.shape_cast %14 : vector<1x1x64xf32> to vector<1x64xf32>
    %16 = vector.broadcast %15 : vector<1x64xf32> to vector<32x64xf32>
    %17 = arith.addf %13, %16 : vector<32x64xf32>
    %18 = arith.truncf %17 : vector<32x64xf32> to vector<32x64xbf16>
    %c0_14 = arith.constant 0 : index
    %c0_15 = arith.constant 0 : index
    %c0_16 = arith.constant 0 : index
    %c0_17 = arith.constant 0 : index
    %19 = vector.load %arg7[%c0_14, %c0_15, %c0_16, %c0_17] : memref<1x3x32x64xbf16, #tpu.memory_space<vmem>>, vector<1x1x32x64xbf16>
    %20 = vector.shape_cast %19 : vector<1x1x32x64xbf16> to vector<32x64xbf16>
    %21 = vector.shape_cast %18 : vector<32x64xbf16> to vector<1x1x32x64xbf16>
    tpu.vector_store %arg7[%c0_14, %c0_15, %c0_16, %c0_17], %21 {strides = array<i32>} : memref<1x3x32x64xbf16, #tpu.memory_space<vmem>>, vector<1x1x32x64xbf16>,
    %c1 = arith.constant 1 : index
    %c0_18 = arith.constant 0 : index
    %c0_19 = arith.constant 0 : index
    %22 = vector.load %arg5[%c1, %c0_18, %c0_19] : memref<3x64x64xbf16, #tpu.memory_space<vmem>>, vector<1x64x64xbf16>
    %23 = vector.shape_cast %22 : vector<1x64x64xbf16> to vector<64x64xbf16>
    %cst_20 = arith.constant dense<0.000000e+00> : vector<32x64xf32>
    %24 = tpu.matmul %10, %23, %cst_20 {dimension_numbers = #tpu.dot_dimension_numbers<[1], [0], [0], [1], [0, 0, 1, 1], [], []>} : vector<32x64xbf16>, vector<64x64xbf16>, vector<32x64xf32> -> vector<32x64xf32>
    %c1_21 = arith.constant 1 : index
    %c0_22 = arith.constant 0 : index
    %c0_23 = arith.constant 0 : index
    %25 = vector.load %arg6[%c1_21, %c0_22, %c0_23] : memref<3x1x64xf32, #tpu.memory_space<vmem>>, vector<1x1x64xf32>
    %26 = vector.shape_cast %25 : vector<1x1x64xf32> to vector<1x64xf32>
    %27 = vector.broadcast %26 : vector<1x64xf32> to vector<32x64xf32>
    %28 = arith.addf %24, %27 : vector<32x64xf32>
    %29 = arith.truncf %28 : vector<32x64xf32> to vector<32x64xbf16>
    %c0_24 = arith.constant 0 : index
    %c1_25 = arith.constant 1 : index
    %c0_26 = arith.constant 0 : index
    %c0_27 = arith.constant 0 : index
    %30 = vector.load %arg7[%c0_24, %c1_25, %c0_26, %c0_27] : memref<1x3x32x64xbf16, #tpu.memory_space<vmem>>, vector<1x1x32x64xbf16>
    %31 = vector.shape_cast %30 : vector<1x1x32x64xbf16> to vector<32x64xbf16>
    %32 = vector.shape_cast %29 : vector<32x64xbf16> to vector<1x1x32x64xbf16>
    tpu.vector_store %arg7[%c0_24, %c1_25, %c0_26, %c0_27], %32 {strides = array<i32>} : memref<1x3x32x64xbf16, #tpu.memory_space<vmem>>, vector<1x1x32x64xbf16>,
    %c2 = arith.constant 2 : index
    %c0_28 = arith.constant 0 : index
    %c0_29 = arith.constant 0 : index
    %33 = vector.load %arg5[%c2, %c0_28, %c0_29] : memref<3x64x64xbf16, #tpu.memory_space<vmem>>, vector<1x64x64xbf16>
    %34 = vector.shape_cast %33 : vector<1x64x64xbf16> to vector<64x64xbf16>
    %cst_30 = arith.constant dense<0.000000e+00> : vector<32x64xf32>
    %35 = tpu.matmul %10, %34, %cst_30 {dimension_numbers = #tpu.dot_dimension_numbers<[1], [0], [0], [1], [0, 0, 1, 1], [], []>} : vector<32x64xbf16>, vector<64x64xbf16>, vector<32x64xf32> -> vector<32x64xf32>
    %c2_31 = arith.constant 2 : index
    %c0_32 = arith.constant 0 : index
    %c0_33 = arith.constant 0 : index
    %36 = vector.load %arg6[%c2_31, %c0_32, %c0_33] : memref<3x1x64xf32, #tpu.memory_space<vmem>>, vector<1x1x64xf32>
    %37 = vector.shape_cast %36 : vector<1x1x64xf32> to vector<1x64xf32>
    %38 = vector.broadcast %37 : vector<1x64xf32> to vector<32x64xf32>
    %39 = arith.addf %35, %38 : vector<32x64xf32>
    %40 = arith.truncf %39 : vector<32x64xf32> to vector<32x64xbf16>
    %c0_34 = arith.constant 0 : index
    %c2_35 = arith.constant 2 : index
    %c0_36 = arith.constant 0 : index
    %c0_37 = arith.constant 0 : index
    %41 = vector.load %arg7[%c0_34, %c2_35, %c0_36, %c0_37] : memref<1x3x32x64xbf16, #tpu.memory_space<vmem>>, vector<1x1x32x64xbf16>
    %42 = vector.shape_cast %41 : vector<1x1x32x64xbf16> to vector<32x64xbf16>
    %43 = vector.shape_cast %40 : vector<32x64xbf16> to vector<1x1x32x64xbf16>
    tpu.vector_store %arg7[%c0_34, %c2_35, %c0_36, %c0_37], %43 {strides = array<i32>} : memref<1x3x32x64xbf16, #tpu.memory_space<vmem>>, vector<1x1x32x64xbf16>,
    return
  }
  func.func @transform_0(%arg0: i32, %arg1: i32) -> (i32, i32, i32) {
    %c0_i32 = arith.constant 0 : i32
    %c0_i32_0 = arith.constant 0 : i32
    return %arg0, %arg1, %c0_i32 : i32, i32, i32
  }
  func.func @transform_1(%arg0: i32, %arg1: i32) -> (i32, i32, i32) {
    %c0_i32 = arith.constant 0 : i32
    %c0_i32_0 = arith.constant 0 : i32
    %c0_i32_1 = arith.constant 0 : i32
    return %arg0, %c0_i32, %c0_i32_0 : i32, i32, i32
  }
  func.func @transform_2(%arg0: i32, %arg1: i32) -> (i32, i32, i32) {
    %c0_i32 = arith.constant 0 : i32
    %c0_i32_0 = arith.constant 0 : i32
    %c0_i32_1 = arith.constant 0 : i32
    return %arg0, %c0_i32, %c0_i32_0 : i32, i32, i32
  }
  func.func @transform_3(%arg0: i32, %arg1: i32) -> (i32, i32, i32) {
    %c0_i32 = arith.constant 0 : i32
    %c0_i32_0 = arith.constant 0 : i32
    %c0_i32_1 = arith.constant 0 : i32
    %c0_i32_2 = arith.constant 0 : i32
    return %c0_i32, %c0_i32_0, %c0_i32_1 : i32, i32, i32
  }
  func.func @transform_4(%arg0: i32, %arg1: i32) -> (i32, i32, i32) {
    %c0_i32 = arith.constant 0 : i32
    %c0_i32_0 = arith.constant 0 : i32
    %c0_i32_1 = arith.constant 0 : i32
    %c0_i32_2 = arith.constant 0 : i32
    return %c0_i32, %c0_i32_0, %c0_i32_1 : i32, i32, i32
  }
  func.func @transform_5(%arg0: i32, %arg1: i32) -> (i32, i32, i32, i32) {
    %c0_i32 = arith.constant 0 : i32
    %c0_i32_0 = arith.constant 0 : i32
    %c0_i32_1 = arith.constant 0 : i32
    return %arg0, %c0_i32, %arg1, %c0_i32_0 : i32, i32, i32, i32
  }
}

module attributes {stable_mosaic.version = 11 : i64} {
  func.func @_attn_proj_kernel(%arg0: i32, %arg1: i32, %arg2: memref<1x1x32x64xbf16, #tpu.memory_space<vmem>>, %arg3: memref<1x1x64x64xbf16, #tpu.memory_space<vmem>>, %arg4: memref<1x1x64x64xbf16, #tpu.memory_space<vmem>>, %arg5: memref<1x32x64xf32, #tpu.memory_space<vmem>>, %arg6: memref<64x64xbf16, #tpu.memory_space<vmem>>, %arg7: memref<1x64xf32, #tpu.memory_space<vmem>>, %arg8: memref<1x32x64xf32, #tpu.memory_space<vmem>>) attributes {dimension_semantics = [#tpu.dimension_semantics<parallel>, #tpu.dimension_semantics<parallel>], iteration_bounds = array<i64: 2, 2>, scalar_prefetch = 0 : i64, scratch_operands = 0 : i64, tpu.core_type = #tpu.core_type<tc>, window_params = [{transform_indices = @transform_0, window_bounds = array<i64: 1, 1, 32, 64>}, {transform_indices = @transform_1, window_bounds = array<i64: 1, 1, 64, 64>}, {transform_indices = @transform_2, window_bounds = array<i64: 1, 1, 64, 64>}, {transform_indices = @transform_3, window_bounds = array<i64: 1, 32, 64>}, {pipeline_mode = #tpu.pipeline_mode<synchronous>, transform_indices = @transform_4, window_bounds = array<i64: 64, 64>}, {pipeline_mode = #tpu.pipeline_mode<synchronous>, transform_indices = @transform_5, window_bounds = array<i64: 1, 64>}, {transform_indices = @transform_6, window_bounds = array<i64: 1, 32, 64>}]} {
    %c0 = arith.constant 0 : index
    %c0_0 = arith.constant 0 : index
    %c0_1 = arith.constant 0 : index
    %c0_2 = arith.constant 0 : index
    %0 = vector.load %arg2[%c0, %c0_0, %c0_1, %c0_2] : memref<1x1x32x64xbf16, #tpu.memory_space<vmem>>, vector<1x1x32x64xbf16>
    %1 = vector.shape_cast %0 : vector<1x1x32x64xbf16> to vector<32x64xbf16>
    %c0_3 = arith.constant 0 : index
    %c0_4 = arith.constant 0 : index
    %c0_5 = arith.constant 0 : index
    %c0_6 = arith.constant 0 : index
    %2 = vector.load %arg3[%c0_3, %c0_4, %c0_5, %c0_6] : memref<1x1x64x64xbf16, #tpu.memory_space<vmem>>, vector<1x1x64x64xbf16>
    %3 = vector.shape_cast %2 : vector<1x1x64x64xbf16> to vector<64x64xbf16>
    %c0_7 = arith.constant 0 : index
    %c0_8 = arith.constant 0 : index
    %c0_9 = arith.constant 0 : index
    %c0_10 = arith.constant 0 : index
    %4 = vector.load %arg4[%c0_7, %c0_8, %c0_9, %c0_10] : memref<1x1x64x64xbf16, #tpu.memory_space<vmem>>, vector<1x1x64x64xbf16>
    %5 = vector.shape_cast %4 : vector<1x1x64x64xbf16> to vector<64x64xbf16>
    %cst = arith.constant dense<0.000000e+00> : vector<32x64xf32>
    %6 = tpu.matmul %1, %3, %cst {dimension_numbers = #tpu.dot_dimension_numbers<[1], [1], [0], [0], [0, 0, 1, 0], [], []>} : vector<32x64xbf16>, vector<64x64xbf16>, vector<32x64xf32> -> vector<32x64xf32>
    %cst_11 = arith.constant dense<0xFF800000> : vector<32xf32>
    %7 = vector.multi_reduction <maximumf>, %6, %cst_11 [1] : vector<32x64xf32> to vector<32xf32>
    %8 = vector.shape_cast %7 : vector<32xf32> to vector<32x1xf32>
    %9 = vector.broadcast %8 : vector<32x1xf32> to vector<32x64xf32>
    %10 = arith.subf %6, %9 : vector<32x64xf32>
    %11 = math.exp %10 : vector<32x64xf32>
    %cst_12 = arith.constant dense<0.000000e+00> : vector<32xf32>
    %12 = vector.multi_reduction <add>, %11, %cst_12 [1] : vector<32x64xf32> to vector<32xf32>
    %13 = vector.shape_cast %12 : vector<32xf32> to vector<32x1xf32>
    %14 = arith.truncf %11 : vector<32x64xf32> to vector<32x64xbf16>
    %cst_13 = arith.constant dense<0.000000e+00> : vector<32x64xf32>
    %15 = tpu.matmul %14, %5, %cst_13 {dimension_numbers = #tpu.dot_dimension_numbers<[1], [0], [0], [1], [0, 0, 1, 1], [], []>} : vector<32x64xbf16>, vector<64x64xbf16>, vector<32x64xf32> -> vector<32x64xf32>
    %16 = tpu.reciprocal %13 {approx = true} : vector<32x1xf32> -> vector<32x1xf32>
    %17 = vector.broadcast %16 : vector<32x1xf32> to vector<32x64xf32>
    %18 = arith.mulf %15, %17 : vector<32x64xf32>
    %19 = arith.truncf %18 : vector<32x64xf32> to vector<32x64xbf16>
    %c0_14 = arith.constant 0 : index
    %c0_15 = arith.constant 0 : index
    %20 = vector.load %arg6[%c0_14, %c0_15] : memref<64x64xbf16, #tpu.memory_space<vmem>>, vector<64x64xbf16>
    %cst_16 = arith.constant dense<0.000000e+00> : vector<32x64xf32>
    %21 = tpu.matmul %19, %20, %cst_16 {dimension_numbers = #tpu.dot_dimension_numbers<[1], [0], [0], [1], [0, 0, 1, 1], [], []>} : vector<32x64xbf16>, vector<64x64xbf16>, vector<32x64xf32> -> vector<32x64xf32>
    %c0_17 = arith.constant 0 : index
    %c0_18 = arith.constant 0 : index
    %22 = vector.load %arg7[%c0_17, %c0_18] : memref<1x64xf32, #tpu.memory_space<vmem>>, vector<1x64xf32>
    %23 = vector.broadcast %22 : vector<1x64xf32> to vector<32x64xf32>
    %24 = arith.addf %21, %23 : vector<32x64xf32>
    %c0_19 = arith.constant 0 : index
    %c0_20 = arith.constant 0 : index
    %c0_21 = arith.constant 0 : index
    %25 = vector.load %arg5[%c0_19, %c0_20, %c0_21] : memref<1x32x64xf32, #tpu.memory_space<vmem>>, vector<1x32x64xf32>
    %26 = vector.shape_cast %25 : vector<1x32x64xf32> to vector<32x64xf32>
    %27 = arith.addf %26, %24 : vector<32x64xf32>
    %c0_22 = arith.constant 0 : index
    %c0_23 = arith.constant 0 : index
    %c0_24 = arith.constant 0 : index
    %28 = vector.load %arg8[%c0_22, %c0_23, %c0_24] : memref<1x32x64xf32, #tpu.memory_space<vmem>>, vector<1x32x64xf32>
    %29 = vector.shape_cast %28 : vector<1x32x64xf32> to vector<32x64xf32>
    %30 = vector.shape_cast %27 : vector<32x64xf32> to vector<1x32x64xf32>
    tpu.vector_store %arg8[%c0_22, %c0_23, %c0_24], %30 {strides = array<i32>} : memref<1x32x64xf32, #tpu.memory_space<vmem>>, vector<1x32x64xf32>,
    return
  }
  func.func @transform_0(%arg0: i32, %arg1: i32) -> (i32, i32, i32, i32) {
    %c0_i32 = arith.constant 0 : i32
    %c0_i32_0 = arith.constant 0 : i32
    %c0_i32_1 = arith.constant 0 : i32
    return %arg0, %c0_i32, %arg1, %c0_i32_0 : i32, i32, i32, i32
  }
  func.func @transform_1(%arg0: i32, %arg1: i32) -> (i32, i32, i32, i32) {
    %c1_i32 = arith.constant 1 : i32
    %c0_i32 = arith.constant 0 : i32
    %c0_i32_0 = arith.constant 0 : i32
    %c0_i32_1 = arith.constant 0 : i32
    return %arg0, %c1_i32, %c0_i32, %c0_i32_0 : i32, i32, i32, i32
  }
  func.func @transform_2(%arg0: i32, %arg1: i32) -> (i32, i32, i32, i32) {
    %c2_i32 = arith.constant 2 : i32
    %c0_i32 = arith.constant 0 : i32
    %c0_i32_0 = arith.constant 0 : i32
    %c0_i32_1 = arith.constant 0 : i32
    return %arg0, %c2_i32, %c0_i32, %c0_i32_0 : i32, i32, i32, i32
  }
  func.func @transform_3(%arg0: i32, %arg1: i32) -> (i32, i32, i32) {
    %c0_i32 = arith.constant 0 : i32
    %c0_i32_0 = arith.constant 0 : i32
    return %arg0, %arg1, %c0_i32 : i32, i32, i32
  }
  func.func @transform_4(%arg0: i32, %arg1: i32) -> (i32, i32) {
    %c0_i32 = arith.constant 0 : i32
    %c0_i32_0 = arith.constant 0 : i32
    %c0_i32_1 = arith.constant 0 : i32
    return %c0_i32, %c0_i32_0 : i32, i32
  }
  func.func @transform_5(%arg0: i32, %arg1: i32) -> (i32, i32) {
    %c0_i32 = arith.constant 0 : i32
    %c0_i32_0 = arith.constant 0 : i32
    %c0_i32_1 = arith.constant 0 : i32
    return %c0_i32, %c0_i32_0 : i32, i32
  }
  func.func @transform_6(%arg0: i32, %arg1: i32) -> (i32, i32, i32) {
    %c0_i32 = arith.constant 0 : i32
    %c0_i32_0 = arith.constant 0 : i32
    return %arg0, %arg1, %c0_i32 : i32, i32, i32
  }
}

</mosaic_0001>

<bundles_post_ra>
// kernel: attn_block_pallas.3
= control target key start
LH: loop header
LB: loop body
LE: loop exit
PB: predicated region body
PF: predicated region fallthrough
CT: control target
= control target key end

     0   :  { %8 = vsyncpa [#allocation5], 0  ;;  %s694_s0 = inlined_call_operand.hbm [shape: f32[2,64,64], index: 0, kind: input, shape index: {}]   ;;  %s695_s1 = inlined_call_operand.vmem [shape: f32[2,1,64], index: 1, kind: output, shape index: {0}]   ;;  %s696_s2 = inlined_call_operand.vmem [shape: f32[2,1,64], index: 2, kind: output, shape index: {1}]  }
   0x1   :  { %10 = vsyncpa [#allocation5 + $0x1], 0  ;;  %s544_s9 = smov 0   ;;  %s546_s10 = smov 0  }
   0x2   :  { %s548_s11 = smov 0   ;;  %s550_s12 = smov 0  }
   0x3   :  { %s552_s13 = smov 0   ;;  %s554_s14 = smov 0  }
   0x4   :  { %s556_s15 = smov 0   ;;  %s558_s16 = smov 0  }
   0x5 LB: > { %s341_s17 = sadd.s32 4294967295, %s523_s16   ;;  %s25_s18 = sadd.s32 1, %s515_s14  ;;  %s523_s16 = sphi %s558_s16, %s16_s16   ;;  %s519_s15 = sphi %s556_s15, %s706_s15   ;;  %s515_s14 = sphi %s554_s14, %s705_s14   ;;  %s511_s13 = sphi %s552_s13, %s704_s13   ;;  %s507_s12 = sphi %s550_s12, %s703_s12   ;;  %s503_s11 = sphi %s548_s11, %s702_s11   ;;  %s499_s10 = sphi %s546_s10, %s701_s10   ;;  %s495_s9 = sphi %s544_s9, %s700_s9  }
   0x6   : > { %p26_p0 = scmp.ge.s32.totalorder %s25_s18, 2  ;;  %s28_s19 = sadd.s32 1, %s519_s15 }
   0x7   : > { %s37_s20 = sadd.s32 1, %s503_s11  ;;  %p44_p1 = scmp.ne.s32.totalorder %s503_s11, %s499_s10 }
   0x8   : > { %s708_s18 = smov (%p26_p0, %s25_s18), 0  ;;  %s710_s19 = smov (!%p26_p0, %s28_s19), %s519_s15 }
   0x9   : > { %s33_s21 = ssub.s32 %s515_s14, %s708_s18  ;;  %p45_p2 = scmp.eq.s32.totalorder %s523_s16, 0 }
   0xa   : > { %p30_p3 = scmp.ge.s32.totalorder %s710_s19, 2  ;;  %p50_p4 = scmp.ne.s32.totalorder %s499_s10, %s495_s9 }
   0xb   : > { %p595_p5 = por %p45_p2, %p44_p1  ;;  %p51_p6 = scmp.eq.s32.totalorder %s341_s17, 0 }
   0xc   : > { %s712_s19 = smov (%p30_p3, %s710_s19), 0  ;;  %p361_p8 = scmp.lt.s32.totalorder %s523_s16, 4 }
   0xd   : > { %p601_p7 = por %p51_p6, %p50_p4  ;;  %s32_s24 = ssub.s32 %s519_s15, %s712_s19 }
   0xe   : > { %s34_s25 = sor.u32 %s33_s21, %s32_s24  ;;  %s126_s26 = sand.u32 1, %s503_s11  }
   0xf   : > { %p35_p9 = scmp.eq.s32.totalorder %s34_s25, 0  ;;  %s345_s27 = sshll.u32 %s126_s26, 5 }
  0x10   : > { %s346_s28 = sshll.u32 %s515_s14, 2  ;;  %s347_s30 = sshll.u32 %s519_s15, 3 }
  0x11   : > { %s611_s29 = scalar_select %p35_p9, %s503_s11, %s37_s20  }
  0x12   : > { %s136_s3 = sadd.s32 %s347_s30, %s346_s28  ;;  %s130_s4 = scalar_lea.vmem [#allocation4], %s345_s27 }
  0x13   : > { %s139_s5 = sshll.u32 %s130_s4, 4  ;;  %s348_s6 = sshll.u32 %s136_s3, 7  ;;  %s140_s5 = int_to_ptr.vmem [resolvable:$true] %s139_s5 }
  0x14   : > { %s138_s9 = scalar_lea.hbm %s694_s0, %s348_s6  ;;  %p621_p10 = pnand %p361_p8, %p595_p5 }
  0x15   : > { %p349_p11 = scmp.ge.s32.totalorder %s523_s16, 1  ;;  %s127_s20 = scalar_lea.sflag [#allocation5], %s126_s26 }
  0x16   : > { %p431_p12 = pneg %p621_p10  ;;  %s442_s21 = scalar_lea.vmem %s140_s5, 512 }
  0x17   : > { %p443_p13 = scmp.ne.s32.totalorder %s140_s5, %s442_s21  ;;  %s525_s24 = smov [#allocation4]  }
  0x18   : > { %s447_s25 = sshll.u32 %s525_s24, 4  ;;  %s448_s25 = int_to_ptr.vmem [resolvable:$false] %s447_s25 }
  0x19   : > { %p445_p0 = pnand %p443_p13, %p431_p12  ;;  %s449_s27 = scalar_lea.vmem %s448_s25, 1024 }
  0x1a   : > { %p450_p2 = scmp.lt.s32.totalorder %s140_s5, %s448_s25  ;;  %p451_p3 = scmp.lt.s32.totalorder %s449_s27, %s442_s21 }
  0x1b   : > { %p446_p1 = pneg %p445_p0 }
  0x1c   : > { %p452_p4 = por %p451_p3, %p450_p2 }
  0x1e   : > { %p453_p5 = pnand %p452_p4, %p446_p1 }
  0x20   : > { %456 = shalt.err (!%p453_p5)
}
  0x21   : > { %s526_s22 = smov 128   ;;  %s527_s26 = smov 8  }
  0x22   : > { %360 = dma.hbm_to_vmem [thread:$0]  (!%p621_p10), %s138_s9, 512, %s140_s5, %s127_s20, %s526_s22, %s526_s22, %s527_s26  }
  0x23   : > { %p147_p6 = scmp.lt.s32.totalorder %s523_s16, 5 }
  0x25   : > { %p148_p8 = pnand %p349_p11, %p147_p6 }
  0x26   : > { %s153_s28 = sand.u32 (!%p148_p8), 1, %s499_s10  }
  0x27   : > { %151 = sbr.rel (%p148_p8) target bundleno = 88 (0x58), region = 24  ;;  %s350_s30 = sshll.u32 (!%p148_p8), %s153_s28, 5 }
  0x28   : > { %s154_s3 = scalar_lea.sflag (!%p148_p8), [#allocation5], %s153_s28  ;;  %s157_s4 = scalar_lea.vmem (!%p148_p8), [#allocation4], %s350_s30 }
  0x2c   : > { %490 = dma.done.wait (%p601_p7), %s154_s3, 512  }
  0x2d   : > { %492 = vsyncadd (%p601_p7), %s154_s3, 4294966784  ;;  %p180_p9 = scmp.lt.s32.totalorder %s511_s13, 1  ;;  %p351_p10 = scmp.ne.s32.totalorder %s507_s12, 0 }
  0x2f   : > { %s714_s13 = smov (!%p180_p9, %s511_s13), 1  ;;  %189 = sbr.rel (%p351_p10) target bundleno = 54 (0x36), region = 32 }
  0x30   : > { %s182_s7 = scalar_lea.vmem %s695_s1, %s714_s13  ;;  %s185_s17 = scalar_lea.vmem %s696_s2, %s714_s13 }
  0x34   : > { %vm190_vm0 = vcmask 516096   ;;  %v528_v0 = vmov 0.0  }
  0x35   : > { %191 = vst.msk [vmem:[#allocation2] sm:$0x1] %vm190_vm0, %v528_v0  ;;  %192 = vst.msk [vmem:[#allocation3] sm:$0x1] %vm190_vm0, %v528_v0 }
  0x36 PF: > { %v193_v1 = vld [vmem:[%s157_s4] sm:$0xff]  ;;  %v194_v2 = vld [vmem:[%s157_s4 + $0x8] sm:$0xff]  ;;  %v195_v3 = vld [vmem:[%s157_s4 + $0x10] sm:$0xff]  ;;  %vm198_vm1 = vcmask 523264   ;;  %vm213_vm2 = vcmask 516096   ;;  %p352_p7 = scmp.ne.s32.totalorder %s507_s12, 1 }
  0x37   : > { %v196_v4 = vld [vmem:[%s157_s4 + $0x18] sm:$0xff]  ;;  %v199_v5 = vsel %vm198_vm1, %v193_v1, 0.0  ;;  %v200_v6 = vsel %vm198_vm1, %v194_v2, 0.0  ;;  %v202_v7 = vsel %vm198_vm1, %v195_v3, 0.0  ;;  %v216_v8 = vmul.f32 %v193_v1, %v193_v1 }
  0x38   : > { %v201_v9 = vadd.f32 %v200_v6, %v199_v5  ;;  %v217_v10 = vmul.f32 %v194_v2, %v194_v2  ;;  %v218_v11 = vmul.f32 %v195_v3, %v195_v3  ;;  %v204_v12 = vsel %vm198_vm1, %v196_v4, 0.0 }
  0x39   : > { %v219_v13 = vmul.f32 %v196_v4, %v196_v4  ;;  %v220_v14 = vsel %vm198_vm1, %v216_v8, 0.0 }
  0x3a   : > { %v203_v15 = vadd.f32 %v202_v7, %v201_v9  ;;  %v221_v16 = vsel %vm198_vm1, %v217_v10, 0.0  ;;  %v223_v17 = vsel %vm198_vm1, %v218_v11, 0.0 }
  0x3b   : > { %v222_v18 = vadd.f32 %v221_v16, %v220_v14  ;;  %v225_v20 = vsel %vm198_vm1, %v219_v13, 0.0 }
  0x3c   : > { %v205_v19 = vadd.f32 %v204_v12, %v203_v15  ;;  %v197_v31 = vld [vmem:[#allocation2] sm:$0x1]  ;;  %v215_v36 = vld [vmem:[#allocation3] sm:$0x1] }
  0x3d   : > { %v224_v21 = vadd.f32 %v223_v17, %v222_v18 }
  0x3e   : > { %v206_v22 = vrot.slane %v205_v19, 4 }
  0x3f   : > { %v226_v23 = vadd.f32 %v225_v20, %v224_v21 }
  0x40   : > { %v207_v24 = vadd.f32 %v206_v22, %v205_v19 }
  0x41   : > { %v227_v25 = vrot.slane %v226_v23, 4 }
  0x42   : > { %v208_v26 = vrot.slane %v207_v24, 2 }
  0x43   : > { %v228_v27 = vadd.f32 %v227_v25, %v226_v23 }
  0x44   : > { %v209_v28 = vadd.f32 %v208_v26, %v207_v24 }
  0x45   : > { %v229_v29 = vrot.slane %v228_v27, 2 }
  0x46   : > { %v210_v30 = vrot.slane %v209_v28, 1 }
  0x47   : > { %v230_v32 = vadd.f32 %v229_v29, %v228_v27 }
  0x48   : > { %v211_v33 = vadd.f32 %v210_v30, %v209_v28 }
  0x49   : > { %v231_v34 = vrot.slane %v230_v32, 1 }
  0x4a   : > { %v212_v35 = vadd.f32 %v211_v33, %v197_v31 }
  0x4b   : > { %v232_v37 = vadd.f32 %v231_v34, %v230_v32  ;;  %238 = sbr.rel (%p352_p7) target bundleno = 88 (0x58), region = 36 }
  0x4c   : > { %214 = vst.msk [vmem:[#allocation2] sm:$0x1] %vm213_vm2, %v212_v35 }
  0x4d   : > { %v233_v38 = vadd.f32 %v232_v37, %v215_v36 }
  0x4f   : > { %234 = vst.msk [vmem:[#allocation3] sm:$0x1] %vm213_vm2, %v233_v38 }
  0x53   : > { %v239_v39 = vld [vmem:[#allocation2] sm:$0x1] }
  0x54   : > { %240 = vst.msk [vmem:[%s182_s7] sm:$0x1] %vm213_vm2, %v239_v39 }
  0x56   : > { %v241_v40 = vld [vmem:[#allocation3] sm:$0x1] }
  0x57   : > { %242 = vst.msk [vmem:[%s185_s17] sm:$0x1] %vm213_vm2, %v241_v40 }
  0x58 PF: > { %s16_s16 = sadd.s32 1, %s523_s16   ;;  %s700_s9 = smov %s499_s10 }
  0x59   : > { %p13_p11 = scmp.ge.s32.totalorder %s16_s16, 6   ;;  %s701_s10 = smov %s503_s11 }
  0x5a   : > { %s702_s11 = smov %s611_s29  ;;  %s703_s12 = smov %s515_s14 }
  0x5b   : > { %s704_s13 = smov %s519_s15  ;;  %s705_s14 = smov %s708_s18 }
  0x5c   : > { %s706_s15 = smov %s712_s19  ;;  %15 = sbr.rel (!%p13_p11) target bundleno = 5 (0x5), region = 84 }
  0x61   :  { %272 = vsyncpa [#allocation5], 1 }
  0x62   :  { %274 = vsyncpa [#allocation5 + $0x1], 1 }

// kernel: attn_block_pallas.4
= control target key start
LH: loop header
LB: loop body
LE: loop exit
PB: predicated region body
PF: predicated region fallthrough
CT: control target
= control target key end

     0   :  { %s1126_s18 = smov 0   ;;  %s1128_s19 = smov 0   ;;  %s1310_s0 = inlined_call_operand.vmem [shape: f32[2,64,64], index: 0, kind: input, shape index: {}]   ;;  %s1311_s1 = inlined_call_operand.vmem [shape: f32[2,1,64], index: 1, kind: input, shape index: {}]   ;;  %s1312_s2 = inlined_call_operand.vmem [shape: f32[2,1,64], index: 2, kind: input, shape index: {}]   ;;  %s1313_s3 = inlined_call_operand.vmem [shape: bf16[3,64,64], index: 3, kind: input, shape index: {}]   ;;  %s1314_s4 = inlined_call_operand.vmem [shape: f32[3,1,64], index: 4, kind: input, shape index: {}]   ;;  %s1315_s5 = inlined_call_operand.vmem [shape: bf16[2,3,64,64], index: 5, kind: output, shape index: {}]  }
   0x1   :  { %s1130_s20 = smov 0   ;;  %s1132_s21 = smov 0  }
   0x2   :  { %s1134_s22 = smov 0   ;;  %s1136_s23 = smov 0  }
   0x3   :  { %s1138_s24 = smov 0  }
   0x4 LB: > { %s24_s25 = sadd.s32 1, %s1086_s22  ;;  %s27_s26 = sadd.s32 1, %s1090_s23  ;;  %s1094_s24 = sphi %s1138_s24, %s15_s24   ;;  %s1090_s23 = sphi %s1136_s23, %s1325_s23   ;;  %s1086_s22 = sphi %s1134_s22, %s1324_s22   ;;  %s1082_s21 = sphi %s1132_s21, %s1323_s21   ;;  %s1078_s20 = sphi %s1130_s20, %s1322_s20   ;;  %s1074_s19 = sphi %s1128_s19, %s1321_s19   ;;  %s1070_s18 = sphi %s1126_s18, %s1320_s18  }
   0x5   : > { %p25_p0 = scmp.ge.s32.totalorder %s24_s25, 2  ;;  %s831_s27 = sadd.s32 4294967295, %s1094_s24  }
   0x6   : > { %p168_p1 = scmp.ne.s32.totalorder %s1074_s19, %s1070_s18  ;;  %p169_p2 = scmp.eq.s32.totalorder %s831_s27, 3 }
   0x7   : > { %s1327_s25 = smov (%p25_p0, %s24_s25), 0  ;;  %s1329_s26 = smov (!%p25_p0, %s27_s26), %s1090_s23 }
   0x8   : > { %s154_s28 = ssub.s32 %s1086_s22, %s1327_s25  ;;  %p29_p3 = scmp.ge.s32.totalorder %s1329_s26, 2 }
   0x9   : > { %p835_p4 = scmp.ge.s32.totalorder %s1094_s24, 1  ;;  %p1170_p5 = por %p169_p2, %p168_p1 }
   0xa   : > { %p224_p6 = scmp.lt.s32.totalorder %s1094_s24, 5  ;;  %s1331_s26 = smov (%p29_p3, %s1329_s26), 0 }
   0xb   : > { %1318 = sst [smem:[#allocation3_spill]] %s1331_s26  ;;  %s153_s30 = ssub.s32 %s1090_s23, %s1331_s26 }
   0xc   : > { %p225_p7 = pnand %p835_p4, %p224_p6  ;;  %s155_s6 = sor.u32 %s154_s28, %s153_s30 }
   0xd   : > { %s158_s7 = sadd.s32 1, %s1074_s19  ;;  %p156_p8 = scmp.eq.s32.totalorder %s155_s6, 0 }
   0xe   : > { %228 = sbr.rel (%p225_p7) target bundleno = 264 (0x108), region = 40  ;;  %s1186_s11 = sshll.u32 (!%p225_p7), %s1078_s20, 2 }
   0xf   : > { %s1181_s8 = scalar_select %p156_p8, %s1074_s19, %s158_s7  }
  0x10   : > { %p262_p9 = scmp.lt.s32.totalorder (!%p225_p7), %s1082_s21, 1  ;;  %p264_p10 = scmp.lt.s32.totalorder (!%p225_p7), %s1186_s11, 7 }
  0x13   : > { %v1028_v0 = vld [vmem:[%s1313_s3 + $0x18] sm:$0xff]   ;;  %v1029_v1 = vld [vmem:[%s1313_s3 + $0x10] sm:$0xff]   ;;  %s263_s16 = scalar_select %p262_p9, %s1082_s21, 1  ;;  %v1030_v3 = vld [vmem:[%s1313_s3 + $0x8] sm:$0xff]   ;;  %vm346_vm0 = vcmask 523264   ;;  %vm418_vm1 = vcmask 519168  }
  0x14   : > { %934 = vmatprep.subr.bf16.mxu0 %v1028_v0  ;;  %v1031_v2 = vld [vmem:[%s1313_s3 + $0x38] sm:$0xff]   ;;  %s265_s20 = scalar_select %p264_p10, %s1186_s11, 7  ;;  %v1033_v4 = vld [vmem:[%s1313_s3 + $0x30] sm:$0xff]   ;;  %v1032_v5 = vld [vmem:[%s1313_s3] sm:$0xff]  }
  0x15   : > { %935 = vmatpush3.bf16.msra.mxu0 %v1028_v0  ;;  %946 = vmatprep.subr.bf16.mxu1 %v1031_v2  ;;  %s837_s6 = sshll.u32 %s263_s16, 3  ;;  %s273_s10 = scalar_lea.vmem %s1311_s1, %s263_s16  ;;  %v1035_v8 = vld [vmem:[%s1313_s3 + $0x28] sm:$0xff]   ;;  %v1037_v17 = vld [vmem:[%s1313_s3 + $0x20] sm:$0xff]   ;;  %v1034_v21 = vld [vmem:[%s1313_s3 + $0x58] sm:$0xff]  }
  0x16   : > { %936 = vmatprep.subr.bf16.mxu0 %v1029_v1  ;;  %947 = vmatpush3.bf16.msra.mxu1 %v1031_v2  ;;  %s267_s14 = sadd.s32 %s837_s6, %s265_s20  ;;  %s276_s27 = scalar_lea.vmem %s1312_s2, %s263_s16  ;;  %v839_v6 = vld [vmem:[%s273_s10] ss:$0 sm:$0xff]  ;;  %v1036_v25 = vld [vmem:[%s1313_s3 + $0x50] sm:$0xff]   ;;  %v1038_v26 = vld [vmem:[%s1313_s3 + $0x48] sm:$0xff]  }
  0x17   : > { %948 = vmatprep.subr.bf16.mxu1 %v1033_v4  ;;  %s838_s28 = sshll.u32 %s267_s14, 3  ;;  %v840_v7 = vld [vmem:[%s276_s27] ss:$0 sm:$0xff]  ;;  %v861_v31 = vld [vmem:[%s1314_s4 + $0x1] ss:$0 sm:$0xff]  ;;  %s971_s6 = smul.u32 (%p1170_p5), 24, %s1082_s21 }
  0x18   : > { %s269_s12 = scalar_lea.vmem %s1310_s0, %s838_s28  ;;  %v1039_v27 = vld [vmem:[%s1313_s3 + $0x40] sm:$0xff]   ;;  %s258_s28 = sand.u32 1, %s1070_s18  }
  0x19   : > { %937 = vmatpush3.bf16.msra.mxu0 %v1029_v1  ;;  %v279_v9 = vld [vmem:[%s269_s12] sm:$0xff]  ;;  %v280_v10 = vld [vmem:[%s269_s12 + $0x8] sm:$0xff]  ;;  %v281_v11 = vld [vmem:[%s269_s12 + $0x10] sm:$0xff]  ;;  %s970_s30 = smul.u32 48, %s258_s28  ;;  %s654_s10 = sadd.s32 (%p1170_p5), %s971_s6, %s1186_s11 }
  0x1a   : > { %938 = vmatprep.subr.bf16.mxu0 %v1030_v3  ;;  %v290_v12 = vmul.f32 %v839_v6, %v279_v9  ;;  %v291_v13 = vmul.f32 %v839_v6, %v280_v10  ;;  %949 = vmatpush3.bf16.msra.mxu1 %v1033_v4  ;;  %v282_v14 = vld [vmem:[%s269_s12 + $0x18] sm:$0xff]  ;;  %v292_v15 = vmul.f32 %v839_v6, %v281_v11  ;;  %v841_v28 = vld [vmem:[%s1314_s4] ss:$0 sm:$0xff]  ;;  %v885_v54 = vld [vmem:[%s1314_s4 + $0x2] ss:$0 sm:$0xff]  ;;  %s901_s13 = sshll.u32 (%p1170_p5), %s654_s10, 2 }
  0x1b   : > { %v293_v16 = vmul.f32 %v839_v6, %v282_v14  ;;  %950 = vmatprep.subr.bf16.mxu1 %v1035_v8  ;;  %s1247_s20 = scalar_lea.vmem [#allocation2], %s970_s30  ;;  %s656_s15 = scalar_lea.vmem (%p1170_p5), %s1315_s5, %s901_s13 }
  0x1c   : > { %v301_v18 = vadd.f32 %v840_v7, %v290_v12  ;;  %v302_v19 = vadd.f32 %v840_v7, %v291_v13  ;;  %v303_v20 = vadd.f32 %v840_v7, %v292_v15 }
  0x1d   : > { %939 = vmatpush3.bf16.msra.mxu0 %v1030_v3  ;;  %v304_v22 = vadd.f32 %v840_v7, %v293_v16 }
  0x1e   : > { %940 = vmatprep.subr.bf16.mxu0 %v1032_v5  ;;  %v305_v23 = vpack.c.bf16 %v302_v19, %v301_v18  ;;  %951 = vmatpush3.bf16.msra.mxu1 %v1035_v8 }
  0x1f   : > { %v306_v24 = vpack.c.bf16 %v304_v22, %v303_v20  ;;  %952 = vmatprep.subr.bf16.mxu1 %v1037_v17 }
  0x20   : > { %942 = vmatprep.mubr.msk.bf16.mxu0 %vm346_vm0, %v305_v23  ;;  %954 = vmatprep.mubr.msk.bf16.mxu1 %vm346_vm0, %v305_v23 }
  0x21   : > { %941 = vmatpush3.bf16.msra.mxu0 %v1032_v5 }
  0x22   : > { %958 = vmatprep.subr.bf16.mxu0 %v1034_v21  ;;  %953 = vmatpush3.bf16.msra.mxu1 %v1037_v17 }
  0x24   : > { %943 = vmatmul.mubr.msk.bf16.vlgmr.msra.gmra.mxu0 %vm346_vm0, %v306_v24 }
  0x25   : > { %959 = vmatpush3.bf16.msra.mxu0 %v1034_v21  ;;  %966 = vmatprep.mubr.msk.bf16.mxu0 %vm346_vm0, %v305_v23 }
  0x26   : > { %960 = vmatprep.subr.bf16.mxu0 %v1036_v25  ;;  %955 = vmatmul.mubr.msk.bf16.vlgmr.msra.gmra.mxu1 %vm346_vm0, %v306_v24 }
  0x29   : > { %961 = vmatpush3.bf16.msra.mxu0 %v1036_v25 }
  0x2a   : > { %962 = vmatprep.subr.bf16.mxu0 %v1038_v26 }
  0x2d   : > { %963 = vmatpush3.bf16.msra.mxu0 %v1038_v26 }
  0x2e   : > { %964 = vmatprep.subr.bf16.mxu0 %v1039_v27 }
  0x31   : > { %965 = vmatpush3.bf16.msra.mxu0 %v1039_v27 }
  0x34   : > { %967 = vmatmul.mubr.msk.bf16.vlgmr.msra.gmra.mxu0 %vm346_vm0, %v306_v24 }
  0xe4   : > { %v944_v29 = vpop.f32.mrf.mxu0 }
  0xe5   : > { %v396_v30 = vadd.f32 %v944_v29, %v841_v28 }
  0xe6   : > { %v387_v32 = vpop.f32.mrf.mxu0  ;;  %v956_v35 = vpop.f32.mrf.mxu1 }
  0xe7   : > { %v906_v33 = vpack.c.bf16 %v396_v30, %v396_v30  ;;  %v388_v34 = vadd.f32 %v841_v28, %v387_v32  ;;  %v507_v37 = vadd.f32 %v956_v35, %v861_v31 }
  0xe8   : > { %v945_v36 = vpop.f32.mrf.mxu0  ;;  %v498_v40 = vpop.f32.mrf.mxu1 }
  0xe9   : > { %421 = vst.msk [vmem:[%s1247_s20 + $0x8] sm:$0xf] %vm418_vm1, %v906_v33  ;;  %v904_v38 = vpack.c.bf16 %v388_v34, %v388_v34  ;;  %v399_v39 = vadd.f32 %v945_v36, %v841_v28  ;;  %v910_v42 = vpack.c.bf16 %v507_v37, %v507_v37  ;;  %v499_v43 = vadd.f32 %v861_v31, %v498_v40 }
  0xea   : > { %v390_v41 = vpop.f32.mrf.mxu0  ;;  %v957_v46 = vpop.f32.mrf.mxu1 }
  0xeb   : > { %419 = vst.msk [vmem:[%s1247_s20] sm:$0xf] %vm418_vm1, %v904_v38  ;;  %v907_v44 = vpack.c.bf16 %v399_v39, %v399_v39  ;;  %v391_v45 = vadd.f32 %v841_v28, %v390_v41  ;;  %874 = vst.msk [vmem:[%s1247_s20 + $0x18] sm:$0xf] %vm418_vm1, %v910_v42  ;;  %v908_v47 = vpack.c.bf16 %v499_v43, %v499_v43 }
  0xec   : > { %v510_v48 = vadd.f32 %v957_v46, %v861_v31  ;;  %v501_v50 = vpop.f32.mrf.mxu1 }
  0xed   : > { %422 = vst.msk [vmem:[%s1247_s20 + $0xc] sm:$0xf] %vm418_vm1, %v907_v44  ;;  %v905_v49 = vpack.c.bf16 %v391_v45, %v391_v45  ;;  %872 = vst.msk [vmem:[%s1247_s20 + $0x10] sm:$0xf] %vm418_vm1, %v908_v47  ;;  %v502_v52 = vadd.f32 %v861_v31, %v501_v50 }
  0xee   : > { %v911_v51 = vpack.c.bf16 %v510_v48, %v510_v48 }
  0xef   : > { %420 = vst.msk [vmem:[%s1247_s20 + $0x4] sm:$0xf] %vm418_vm1, %v905_v49  ;;  %v909_v53 = vpack.c.bf16 %v502_v52, %v502_v52 }
  0xf0   : > { %875 = vst.msk [vmem:[%s1247_s20 + $0x1c] sm:$0xf] %vm418_vm1, %v911_v51 }
  0xf1   : > { %873 = vst.msk [vmem:[%s1247_s20 + $0x14] sm:$0xf] %vm418_vm1, %v909_v53 }
  0xf4   : > { %v968_v55 = vpop.f32.mrf.mxu0  ;;  %v677_v4 = vld [vmem:[%s1247_s20 + $0x8] sm:$0xff] (%p1170_p5)  }
  0xf5   : > { %v618_v56 = vadd.f32 %v968_v55, %v885_v54  ;;  %678 = vst [vmem:[%s656_s15 + $0x8] sm:$0xff] (%p1170_p5), %v677_v4  }
  0xf6   : > { %v609_v57 = vpop.f32.mrf.mxu0  ;;  %v673_v3 = vld [vmem:[%s1247_s20] sm:$0xff] (%p1170_p5)  }
  0xf7   : > { %v914_v58 = vpack.c.bf16 %v618_v56, %v618_v56  ;;  %v610_v59 = vadd.f32 %v885_v54, %v609_v57  ;;  %v685_v6 = vld [vmem:[%s1247_s20 + $0x18] sm:$0xff] (%p1170_p5)   ;;  %674 = vst [vmem:[%s656_s15] sm:$0xff] (%p1170_p5), %v673_v3  }
  0xf8   : > { %v969_v60 = vpop.f32.mrf.mxu0  ;;  %v681_v5 = vld [vmem:[%s1247_s20 + $0x10] sm:$0xff] (%p1170_p5)   ;;  %686 = vst [vmem:[%s656_s15 + $0x28] sm:$0xff] (%p1170_p5), %v685_v6  }
  0xf9   : > { %898 = vst.msk [vmem:[%s1247_s20 + $0x28] sm:$0xf] %vm418_vm1, %v914_v58  ;;  %v912_v61 = vpack.c.bf16 %v610_v59, %v610_v59  ;;  %v621_v62 = vadd.f32 %v969_v60, %v885_v54  ;;  %682 = vst [vmem:[%s656_s15 + $0x20] sm:$0xff] (%p1170_p5), %v681_v5  }
  0xfa   : > { %v612_v63 = vpop.f32.mrf.mxu0 }
  0xfb   : > { %896 = vst.msk [vmem:[%s1247_s20 + $0x20] sm:$0xf] %vm418_vm1, %v912_v61  ;;  %v915_v0 = vpack.c.bf16 %v621_v62, %v621_v62  ;;  %v613_v1 = vadd.f32 %v885_v54, %v612_v63  ;;  %651 = sbr.rel (!%p1170_p5) target bundleno = 264 (0x108), region = 44 }
  0xfd   : > { %899 = vst.msk [vmem:[%s1247_s20 + $0x2c] sm:$0xf] %vm418_vm1, %v915_v0  ;;  %v913_v2 = vpack.c.bf16 %v613_v1, %v613_v1 }
  0xff   : > { %897 = vst.msk [vmem:[%s1247_s20 + $0x24] sm:$0xf] %vm418_vm1, %v913_v2 }
 0x104   : > { %v693_v8 = vld [vmem:[%s1247_s20 + $0x28] sm:$0xff]  }
 0x105   : > { %694 = vst [vmem:[%s656_s15 + $0x48] sm:$0xff] %v693_v8  }
 0x106   : > { %v689_v7 = vld [vmem:[%s1247_s20 + $0x20] sm:$0xff]  }
 0x107   : > { %690 = vst [vmem:[%s656_s15 + $0x40] sm:$0xff] %v689_v7  }
 0x108 PF: > { %s15_s24 = sadd.s32 1, %s1094_s24   ;;  %s1319_s11 = sld [smem:[#allocation3_spill]] }
 0x109   : > { %p12_p11 = scmp.ge.s32.totalorder %s15_s24, 6   ;;  %s1320_s18 = smov %s1074_s19 }
 0x10a   : > { %s1321_s19 = smov %s1181_s8  ;;  %s1322_s20 = smov %s1086_s22 }
 0x10b   : > { %s1323_s21 = smov %s1090_s23  ;;  %s1324_s22 = smov %s1327_s25 }
 0x10c   :  { %14 = sbr.rel (!%p12_p11) target bundleno = 4 (0x4), region = 123 }
 0x10e   : > { %s1325_s23 = smov %s1319_s11 }

// kernel: attn_block_pallas.5
= control target key start
LH: loop header
LB: loop body
LE: loop exit
PB: predicated region body
PF: predicated region fallthrough
CT: control target
= control target key end

     0   :  { %s1426_s0 = inlined_call_operand.vmem [shape: bf16[2,3,64,64], index: 0, kind: input, shape index: {}, may-alias: {0,1,2}]   ;;  %s1427_s1 = inlined_call_operand.vmem [shape: bf16[2,3,64,64], index: 1, kind: input, shape index: {}, may-alias: {0,1,2}]   ;;  %s1428_s2 = inlined_call_operand.vmem [shape: bf16[2,3,64,64], index: 2, kind: input, shape index: {}, may-alias: {0,1,2}]   ;;  %s1429_s3 = inlined_call_operand.vmem [shape: f32[2,64,64], index: 3, kind: input, shape index: {}]   ;;  %s1430_s4 = inlined_call_operand.vmem [shape: bf16[64,64], index: 4, kind: input, shape index: {}]   ;;  %s1431_s5 = inlined_call_operand.vmem [shape: f32[1,64], index: 5, kind: input, shape index: {}]   ;;  %s1432_s6 = inlined_call_operand.hbm [shape: f32[2,64,64], index: 6, kind: output, shape index: {}]  }
   0x1   :  { %1434 = sst [smem:[#allocation6_spill]] %s1426_s0 }
   0x2   :  { %1435 = sst [smem:[#allocation7_spill]] %s1427_s1 }
   0x3   :  { %11 = vsyncpa [#allocation3], 0 }
   0x4   :  { %13 = vsyncpa [#allocation3 + $0x1], 0  ;;  %s1217_s21 = smov 0   ;;  %s1219_s22 = smov 0  }
   0x5   :  { %s1221_s23 = smov 0   ;;  %s1223_s24 = smov 0  }
   0x6   :  { %s1225_s25 = smov 0   ;;  %s1227_s26 = smov 0  }
   0x7   :  { %s1229_s27 = smov 0   ;;  %s1231_s28 = smov 0  }
   0x8 LB: > { %s867_s29 = sadd.s32 4294967295, %s1177_s28   ;;  %s868_s30 = sadd.s32 4294967294, %s1177_s28   ;;  %s1177_s28 = sphi %s1231_s28, %s19_s28   ;;  %s1173_s27 = sphi %s1229_s27, %s1448_s27   ;;  %s1169_s26 = sphi %s1227_s26, %s1447_s26   ;;  %s1165_s25 = sphi %s1225_s25, %s1446_s25   ;;  %s1161_s24 = sphi %s1223_s24, %s1445_s24   ;;  %s1157_s23 = sphi %s1221_s23, %s1444_s23   ;;  %s1153_s22 = sphi %s1219_s22, %s1443_s22   ;;  %s1149_s21 = sphi %s1217_s21, %s1442_s21  }
   0x9   : > { %s28_s7 = sadd.s32 1, %s1169_s26  ;;  %s31_s8 = sadd.s32 1, %s1173_s27 }
   0xa   : > { %p29_p0 = scmp.ge.s32.totalorder %s28_s7, 2  ;;  %p200_p1 = scmp.ne.s32.totalorder %s1157_s23, %s1153_s22 }
   0xb   : > { %p201_p2 = scmp.eq.s32.totalorder %s867_s29, 3  ;;  %p206_p5 = scmp.ne.s32.totalorder %s1153_s22, %s1149_s21 }
   0xc   : > { %s1450_s7 = smov (%p29_p0, %s28_s7), 0  ;;  %s1452_s8 = smov (!%p29_p0, %s31_s8), %s1173_s27 }
   0xd   : > { %s186_s9 = ssub.s32 %s1169_s26, %s1450_s7  ;;  %p1268_p3 = por %p201_p2, %p200_p1 }
   0xe   : > { %p33_p4 = scmp.ge.s32.totalorder %s1452_s8, 2  ;;  %p207_p6 = scmp.eq.s32.totalorder %s868_s30, 3 }
   0xf   : > { %p871_p7 = scmp.ge.s32.totalorder %s1177_s28, 1  ;;  %p275_p9 = scmp.lt.s32.totalorder %s1177_s28, 5 }
  0x10   : > { %s1454_s8 = smov (%p33_p4, %s1452_s8), 0  ;;  %p1277_p8 = por %p207_p6, %p206_p5 }
  0x11   : > { %1437 = sst [smem:[#allocation5_spill]] %s1454_s8  ;;  %s185_s12 = ssub.s32 %s1173_s27, %s1454_s8 }
  0x12   : > { %s190_s13 = sadd.s32 1, %s1157_s23  ;;  %s187_s14 = sor.u32 %s186_s9, %s185_s12 }
  0x13   : > { %p276_p10 = pnand %p871_p7, %p275_p9  ;;  %p188_p11 = scmp.eq.s32.totalorder %s187_s14, 0 }
  0x14   : > { %p331_p12 = scmp.lt.s32.totalorder (!%p276_p10), %s1165_s25, 1  ;;  %s1290_s16 = sshll.u32 (!%p276_p10), %s1161_s24, 2 }
  0x15   : > { %s1286_s15 = scalar_select %p188_p11, %s1157_s23, %s190_s13  }
  0x16   : > { %279 = sbr.rel (%p276_p10) target bundleno = 845 (0x34d), region = 44  ;;  %p333_p13 = scmp.lt.s32.totalorder (!%p276_p10), %s1290_s16, 7 }
  0x17   : > { %s1439_s1 = sld [smem:[#allocation7_spill]] (!%p276_p10)  ;;  %s327_s30 = sand.u32 (!%p276_p10), 1, %s1153_s22  }
  0x18   : > { %s1440_s0 = sld [smem:[#allocation6_spill]] (!%p276_p10)  ;;  %s919_s13 = sshll.u32 (!%p276_p10), %s1165_s25, 3 }
  0x1b   : > { %s1294_s17 = scalar_select %p331_p12, %s1165_s25, 1  ;;  %vm414_vm0 = vcmask 523264   ;;  %v1065_v44 = vld [vmem:[%s1430_s4 + $0x18] sm:$0xff]   ;;  %v1066_v45 = vld [vmem:[%s1430_s4 + $0x10] sm:$0xff]   ;;  %v1067_v46 = vld [vmem:[%s1430_s4 + $0x8] sm:$0xff]  }
  0x1c   : > { %s1297_s18 = scalar_select %p333_p13, %s1290_s16, 7  ;;  %v1068_v47 = vld [vmem:[%s1430_s4] sm:$0xff]  }
  0x1d   : > { %s875_s19 = smul.u32 96, %s1294_s17 }
  0x1e   : > { %s981_s20 = smul.u32 24, %s1294_s17 }
  0x1f   : > { %s796_s9 = scalar_lea.vmem %s1439_s1, %s875_s19  ;;  %s800_s29 = scalar_lea.vmem %s1428_s2, %s875_s19 }
  0x20   : > { %v1055_v0 = vld [vmem:[%s796_s9 + $0x38] sm:$0xff]   ;;  %s336_s24 = sadd.s32 %s981_s20, %s1297_s18  ;;  %v1056_v1 = vld [vmem:[%s796_s9 + $0x30] sm:$0xff]   ;;  %v1057_v5 = vld [vmem:[%s796_s9 + $0x28] sm:$0xff]   ;;  %s878_s20 = sshll.u32 %s1294_s17, 3 }
  0x21   : > { %s874_s12 = sshll.u32 %s336_s24, 2  ;;  %977 = vmatprep.subr.msk.bf16.mxu0 %vm414_vm0, %v1055_v0  ;;  %v431_v2 = vsel %vm414_vm0, %v1055_v0, 0  ;;  %v428_v4 = vsel %vm414_vm0, %v1056_v1, 0  ;;  %v425_v6 = vsel %vm414_vm0, %v1057_v5, 0  ;;  %v1058_v7 = vld [vmem:[%s796_s9 + $0x20] sm:$0xff]   ;;  %v1061_v18 = vld [vmem:[%s800_s29 + $0x58] sm:$0xff]   ;;  %s728_s1 = sadd.s32 %s919_s13, %s1290_s16 }
  0x22   : > { %s338_s8 = scalar_lea.vmem %s1440_s0, %s874_s12  ;;  %942 = vmatpush3.bf16.xpose.msra.mxu0 %v431_v2  ;;  %v422_v8 = vsel %vm414_vm0, %v1058_v7, 0  ;;  %v1062_v19 = vld [vmem:[%s800_s29 + $0x50] sm:$0xff]   ;;  %953 = vmatprep.subr.bf16.mxu1 %v1061_v18  ;;  %v1063_v20 = vld [vmem:[%s800_s29 + $0x48] sm:$0xff]   ;;  %v1064_v21 = vld [vmem:[%s800_s29 + $0x40] sm:$0xff]   ;;  %s358_s29 = sadd.s32 %s878_s20, %s1297_s18 }
  0x23   : > { %978 = vmatprep.subr.msk.bf16.mxu0 %vm414_vm0, %v1056_v1  ;;  %v1059_v3 = vld [vmem:[%s338_s8] sm:$0xff]   ;;  %v1060_v9 = vld [vmem:[%s338_s8 + $0x8] sm:$0xff]   ;;  %954 = vmatpush3.bf16.msra.mxu1 %v1061_v18  ;;  %s879_s19 = sshll.u32 %s358_s29, 3  ;;  %s872_s0 = sshll.u32 %s327_s30, 5 }
  0x24   : > { %949 = vmatprep.mubr.msk.bf16.mxu0 %vm414_vm0, %v1059_v3  ;;  %955 = vmatprep.subr.bf16.mxu1 %v1062_v19  ;;  %s360_s12 = scalar_lea.vmem %s1429_s3, %s879_s19  ;;  %v910_v2 = vld [vmem:[%s1431_s5] ss:$0 sm:$0xff]  ;;  %s920_s17 = sshll.u32 %s728_s1, 7 }
  0x25   : > { %s329_s18 = scalar_lea.vmem [#allocation2], %s872_s0  ;;  %s1366_s29 = scalar_lea.hbm %s1432_s6, %s920_s17 }
  0x26   : > { %s731_s25 = sshll.u32 %s329_s18, 4  ;;  %s1375_s0 = scalar_lea.sflag [#allocation3], %s327_s30  ;;  %s1369_s25 = int_to_ptr.vmem [resolvable:$true] %s731_s25 }
  0x27   : > { %956 = vmatpush3.bf16.msra.mxu1 %v1062_v19  ;;  %s1085_s1 = scalar_lea.vmem %s1369_s25, 512  ;;  %s1179_s19 = smov [#allocation2]  }
  0x28   : > { %957 = vmatprep.subr.bf16.mxu1 %v1063_v20  ;;  %p1086_p0 = scmp.ne.s32.totalorder %s1369_s25, %s1085_s1  ;;  %s1089_s9 = sshll.u32 %s1179_s19, 4  ;;  %s1090_s9 = int_to_ptr.vmem [resolvable:$false] %s1089_s9 }
  0x29   : > { %s1091_s24 = scalar_lea.vmem %s1090_s9, 1024  ;;  %p1092_p4 = scmp.lt.s32.totalorder %s1369_s25, %s1090_s9 }
  0x2a   : > { %944 = vmatpush3.bf16.xpose.msra.mxu0 %v428_v4  ;;  %v705_v4 = vld [vmem:[%s360_s12 + $0x10] sm:$0xff]  ;;  %p1087_p1 = pnand %p1086_p0, %p1268_p3  ;;  %p1093_p5 = scmp.lt.s32.totalorder %s1091_s24, %s1085_s1 }
  0x2b   : > { %979 = vmatprep.subr.msk.bf16.mxu0 %vm414_vm0, %v1057_v5  ;;  %958 = vmatpush3.bf16.msra.mxu1 %v1063_v20 }
  0x2c   : > { %959 = vmatprep.subr.bf16.mxu1 %v1064_v21  ;;  %p1088_p2 = pneg %p1087_p1  ;;  %p1094_p6 = por %p1093_p5, %p1092_p4 }
  0x2e   : > { %p1095_p7 = pnand %p1094_p6, %p1088_p2 }
  0x2f   : > { %960 = vmatpush3.bf16.msra.mxu1 %v1064_v21 }
  0x30   : > { %965 = vmatprep.subr.bf16.mxu1 %v1065_v44 }
  0x32   : > { %946 = vmatpush3.bf16.xpose.msra.mxu0 %v425_v6 }
  0x33   : > { %980 = vmatprep.subr.msk.bf16.mxu0 %vm414_vm0, %v1058_v7  ;;  %v703_v7 = vld [vmem:[%s360_s12] sm:$0xff] }
  0x3a   : > { %948 = vmatpush3.bf16.xpose.msra.mxu0 %v422_v8 }
  0x41   : > { %950 = vmatmul.mubr.msk.bf16.vlgmr.msra.gmra.mxu0 %vm414_vm0, %v1060_v9 }
 0x101   : > { %v951_v10 = vpop.f32.mrf.mxu0 }
 0x102   : > { %v488_v11 = vsel %vm414_vm0, %v951_v10, -inf }
 0x103   : > { %489 = vmax.xlane.f32.xlu1 %v488_v11  ;;  %v467_v12 = vpop.f32.mrf.mxu0  ;;  %v706_v11 = vld [vmem:[%s360_s12 + $0x18] sm:$0xff] }
 0x104   : > { %v482_v13 = vsel %vm414_vm0, %v467_v12, -inf }
 0x105   : > { %483 = vmax.xlane.f32.xlu0 %v482_v13  ;;  %v952_v14 = vpop.f32.mrf.mxu0 }
 0x106   : > { %v491_v15 = vsel %vm414_vm0, %v952_v14, -inf }
 0x107   : > { %492 = vmax.xlane.f32.xlu1 %v491_v15  ;;  %v470_v16 = vpop.f32.mrf.mxu0  ;;  %v704_v15 = vld [vmem:[%s360_s12 + $0x8] sm:$0xff] }
 0x108   : > { %v485_v17 = vsel %vm414_vm0, %v470_v16, -inf }
 0x109   : > { %486 = vmax.xlane.f32.xlu0 %v485_v17 }
 0x18c   : > { %v490_v22 = vpop.xlane.xlu1 %489 }
 0x18d   : > { %v496_v23 = vsub.f32 %v951_v10, %v490_v22 }
 0x18e   : > { %v484_v24 = vpop.xlane.xlu0 %483 }
 0x18f   : > { %v494_v25 = vsub.f32 %v467_v12, %v484_v24  ;;  %v502_v27 = vmul.f32 1.442695, %v496_v23 }
 0x190   : > { %v493_v26 = vpop.xlane.xlu1 %492 }
 0x191   : > { %v498_v28 = vmul.f32 1.442695, %v494_v25  ;;  %v497_v29 = vsub.f32 %v952_v14, %v493_v26 }
 0x192   : > { %v487_v30 = vpop.xlane.xlu0 %486 }
 0x193   : > { %1069 = vpow2.f32 %v498_v28  ;;  %v504_v31 = vmul.f32 1.442695, %v497_v29  ;;  %v495_v32 = vsub.f32 %v470_v16, %v487_v30 }
 0x194   : > { %1071 = vpow2.f32 %v502_v27 }
 0x195   : > { %v500_v33 = vmul.f32 1.442695, %v495_v32  ;;  %1073 = vpow2.f32 %v504_v31 }
 0x197   : > { %1075 = vpow2.f32 %v500_v33 }
 0x1a0   : > { %v1070_v34 = vpop.eup %1069 }
 0x1a1   : > { %v506_v35 = vsel %vm414_vm0, %v1070_v34, 0.0  ;;  %v1072_v36 = vpop.eup %1071 }
 0x1a2   : > { %507 = vadd.xlane.f32.xlu0 %v506_v35  ;;  %v1074_v37 = vpop.eup %1073  ;;  %v512_v39 = vsel %vm414_vm0, %v1072_v36, 0.0 }
 0x1a3   : > { %v519_v42 = vpack.c.bf16 %v1074_v37, %v1072_v36  ;;  %v515_v43 = vsel %vm414_vm0, %v1074_v37, 0.0 }
 0x1a4   : > { %v1076_v38 = vpop.eup %1075 }
 0x1a5   : > { %v509_v40 = vsel %vm414_vm0, %v1076_v38, 0.0  ;;  %v518_v41 = vpack.c.bf16 %v1076_v38, %v1070_v34 }
 0x1a6   : > { %513 = vadd.xlane.f32.xlu0 %v512_v39  ;;  %510 = vadd.xlane.f32.xlu1 %v509_v40 }
 0x1a7   : > { %961 = vmatprep.mubr.msk.bf16.mxu1 %vm414_vm0, %v518_v41 }
 0x1a8   : > { %962 = vmatmul.mubr.msk.bf16.vlgmr.msra.gmra.mxu1 %vm414_vm0, %v519_v42 }
 0x1a9   : > { %966 = vmatpush3.bf16.msra.mxu1 %v1065_v44 }
 0x1aa   : > { %516 = vadd.xlane.f32.xlu1 %v515_v43  ;;  %967 = vmatprep.subr.bf16.mxu1 %v1066_v45 }
 0x1ad   : > { %968 = vmatpush3.bf16.msra.mxu1 %v1066_v45 }
 0x1ae   : > { %969 = vmatprep.subr.bf16.mxu1 %v1067_v46 }
 0x1b1   : > { %970 = vmatpush3.bf16.msra.mxu1 %v1067_v46 }
 0x1b2   : > { %971 = vmatprep.subr.bf16.mxu1 %v1068_v47 }
 0x1b5   : > { %972 = vmatpush3.bf16.msra.mxu1 %v1068_v47 }
 0x22b   : > { %v508_v49 = vpop.xlane.xlu0 %507 }
 0x22c   : > { %1077 = vrcp.f32 %v508_v49 }
 0x22f   : > { %v511_v48 = vpop.xlane.xlu1 %510  ;;  %v514_v51 = vpop.xlane.xlu0 %513 }
 0x233   : > { %v517_v50 = vpop.xlane.xlu1 %516 }
 0x234   : > { %1079 = vrcp.f32 %v517_v50 }
 0x235   : > { %1081 = vrcp.f32 %v511_v48 }
 0x236   : > { %1083 = vrcp.f32 %v514_v51 }
 0x239   : > { %v1078_v54 = vpop.eup %1077 }
 0x241   : > { %v1080_v56 = vpop.eup %1079 }
 0x242   : > { %v1082_v57 = vpop.eup %1081 }
 0x243   : > { %v1084_v60 = vpop.eup %1083 }
 0x268   : > { %v963_v52 = vpop.f32.mrf.mxu1 }
 0x269   : > { %v605_v63 = vmul.f32 %v1084_v60, %v963_v52 }
 0x26a   : > { %v584_v53 = vpop.f32.mrf.mxu1 }
 0x26b   : > { %v603_v61 = vmul.f32 %v1078_v54, %v584_v53 }
 0x26c   : > { %v964_v55 = vpop.f32.mrf.mxu1 }
 0x26d   : > { %v606_v58 = vmul.f32 %v1080_v56, %v964_v55 }
 0x26e   : > { %v587_v59 = vpop.f32.mrf.mxu1 }
 0x26f   : > { %v604_v62 = vmul.f32 %v1082_v57, %v587_v59  ;;  %v608_v1 = vpack.c.bf16 %v606_v58, %v605_v63 }
 0x271   : > { %v607_v0 = vpack.c.bf16 %v604_v62, %v603_v61 }
 0x273   : > { %973 = vmatprep.mubr.msk.bf16.mxu1 %vm414_vm0, %v607_v0 }
 0x274   : > { %974 = vmatmul.mubr.msk.bf16.vlgmr.msra.gmra.mxu1 %vm414_vm0, %v608_v1 }
 0x334   : > { %v975_v3 = vpop.f32.mrf.mxu1 }
 0x335   : > { %v697_v5 = vadd.f32 %v975_v3, %v910_v2 }
 0x336   : > { %v688_v6 = vpop.f32.mrf.mxu1 }
 0x337   : > { %v709_v8 = vadd.f32 %v705_v4, %v697_v5  ;;  %v689_v9 = vadd.f32 %v910_v2, %v688_v6 }
 0x338   : > { %v976_v10 = vpop.f32.mrf.mxu1 }
 0x339   : > { %713 = vst.msk [vmem:[%s329_s18 + $0x10] sm:$0xff] %vm414_vm0, %v709_v8  ;;  %v707_v12 = vadd.f32 %v703_v7, %v689_v9  ;;  %v700_v13 = vadd.f32 %v976_v10, %v910_v2 }
 0x33a   : > { %v691_v14 = vpop.f32.mrf.mxu1 }
 0x33b   : > { %711 = vst.msk [vmem:[%s329_s18] sm:$0xff] %vm414_vm0, %v707_v12  ;;  %v710_v16 = vadd.f32 %v706_v11, %v700_v13  ;;  %v692_v17 = vadd.f32 %v910_v2, %v691_v14 }
 0x33d   : > { %714 = vst.msk [vmem:[%s329_s18 + $0x18] sm:$0xff] %vm414_vm0, %v710_v16  ;;  %v708_v18 = vadd.f32 %v704_v15, %v692_v17 }
 0x33f   : > { %712 = vst.msk [vmem:[%s329_s18 + $0x8] sm:$0xff] %vm414_vm0, %v708_v18 }
 0x340   : > { %1098 = shalt.err (!%p1095_p7)
}
 0x341   : > { %s1099_s30 = scalar_lea.hbm %s1366_s29, 512  ;;  %s1103_s14 = scalar_lea.hbm %s1432_s6, 2048 }
 0x342   : > { %p1100_p9 = scmp.ne.s32.totalorder %s1366_s29, %s1099_s30  ;;  %p1104_p12 = scmp.lt.s32.totalorder %s1366_s29, %s1432_s6 }
 0x343   : > { %p1105_p13 = scmp.lt.s32.totalorder %s1103_s14, %s1099_s30 }
 0x344   : > { %p1101_p10 = pnand %p1100_p9, %p1268_p3 }
 0x345   : > { %p1106_p0 = por %p1105_p13, %p1104_p12 }
 0x346   : > { %p1102_p11 = pneg %p1101_p10 }
 0x348   : > { %p1107_p1 = pnand %p1106_p0, %p1102_p11 }
 0x34a   : > { %1110 = shalt.err (!%p1107_p1)
}
 0x34b   : > { %s1180_s18 = smov 128   ;;  %s1181_s20 = smov 8  }
 0x34c   : > { %982 = dma.vmem_to_hbm [thread:$0]  (%p1268_p3), %s1369_s25, 512, %s1366_s29, %s1375_s0, %s1180_s18, %s1180_s18, %s1181_s20  }
 0x34d PF: > { %p988_p2 = scmp.ge.s32.totalorder %s1177_s28, 2  ;;  %s746_s16 = sand.u32 1, %s1149_s21  }
 0x34e   : > { %s747_s1 = scalar_lea.sflag [#allocation3], %s746_s16 }
 0x34f   : > { %p985_p4 = pnand %p988_p2, %p1277_p8 }
 0x351   : > { %p986_p5 = pneg %p985_p4 }
 0x353   : > { %1144 = dma.done.wait (%p986_p5), %s747_s1, 512  }
 0x354   : > { %1146 = vsyncadd (%p986_p5), %s747_s1, 4294966784  ;;  %s19_s28 = sadd.s32 1, %s1177_s28   ;;  %s1441_s10 = sld [smem:[#allocation5_spill]] }
 0x355   : > { %p16_p6 = scmp.ge.s32.totalorder %s19_s28, 6   ;;  %s1442_s21 = smov %s1153_s22 }
 0x356   : > { %s1443_s22 = smov %s1157_s23  ;;  %s1444_s23 = smov %s1286_s15 }
 0x357   : > { %s1445_s24 = smov %s1169_s26  ;;  %s1446_s25 = smov %s1173_s27 }
 0x358   : > { %s1447_s26 = smov %s1450_s7  ;;  %18 = sbr.rel (!%p16_p6) target bundleno = 8 (0x8), region = 88 }
 0x35a   : > { %s1448_s27 = smov %s1441_s10 }
 0x35d   :  { %752 = vsyncpa [#allocation3], 1 }
 0x35e   :  { %754 = vsyncpa [#allocation3 + $0x1], 1 }

</bundles_post_ra>
